<compile_context>
chip_gen: v6e
topology: v6e:2x2x1
jax: 0.10.0
libtpu: 0.0.40
codegen_flags: <defaults>
</compile_context>

<pallas_src>
import math

import jax
import jax.numpy as jnp
from jax.experimental import pallas as pl
from jax.experimental.pallas import tpu as pltpu


def dyt_kernel(alpha_ref, gamma_ref, beta_ref, x_ref, o_ref):
    # alpha_ref: SMEM (1,); gamma/beta: VMEM (1, bl); x/o: VMEM (bn, bl)
    a = alpha_ref[0].astype(jnp.float32)
    x = x_ref[...].astype(jnp.float32)
    t = jnp.tanh(a * x)                      # EUP; free at memory-bound pace
    o_ref[...] = (gamma_ref[...].astype(jnp.float32) * t
                  + beta_ref[...].astype(jnp.float32)).astype(o_ref.dtype)


def _device_defaults():
    """(target_block_bytes, vmem_limit_bytes) tuned per TPU generation."""
    kind = ""
    try:
        kind = jax.devices()[0].device_kind.lower()
    except Exception:  # pragma: no cover - defensive, keep conservative
        pass
    if "v7" in kind:
        # ~8 MiB block -> x+out double buffered ~32 MiB; raise scoped VMEM
        # (64 MiB physical on v7x) to make room.
        return 8 << 20, 48 << 20
    if "v6" in kind:
        # ~5 MiB block -> ~20 MiB total, fits the 32 MiB scoped default.
        return 5 << 20, None
    # v5e and unknown: 2 MiB block -> ~8 MiB total, fits the 16 MiB default.
    return 2 << 20, None


def dyt_forward(x, alpha, gamma, beta, *,
                target_block_bytes=None, vmem_limit_bytes=None):
    """x: (..., C)   alpha: (1,)   gamma: (C,)   beta: (C,)"""
    orig_shape = x.shape
    C = orig_shape[-1]
    itemsize = jnp.dtype(x.dtype).itemsize
    n_rows = x.size // C

    if target_block_bytes is None:
        tb, vl = _device_defaults()
        target_block_bytes = tb
        if vmem_limit_bytes is None:
            vmem_limit_bytes = vl

    # --- lane-dense 2D layout (contiguous row-major x assumed) --------------
    pad_rows = 0
    if C % 128 != 0:
        L = (128 // math.gcd(C, 128)) * C        # lcm(C, 128)
        reps = L // C
        pad_rows = (-n_rows) % reps
        x2 = x.reshape(n_rows, C)
        if pad_rows:
            # Small row pad (< reps <= 128 rows of C elems) keeps stores
            # lane-dense; costs one extra XLA pass on these ragged shapes.
            # TODO(synk): zero-copy bulk+tail split to avoid the pad copy.
            x2 = jnp.pad(x2, ((0, pad_rows), (0, 0)))
        lane = L
        x2 = x2.reshape(-1, lane)
        g2 = jnp.tile(gamma, reps).reshape(1, lane)
        b2 = jnp.tile(beta, reps).reshape(1, lane)
    else:
        lane = C
        x2 = x.reshape(-1, lane)
        g2 = gamma.reshape(1, lane)
        b2 = beta.reshape(1, lane)

    N = x2.shape[0]

    # --- tile sizing ---------------------------------------------------------
    # Lane tile: multiple of 128, capped so tile bytes don't grow with C.
    bl = min(lane, 2048)

    # Row tile: sized by bytes (per-generation target), multiple of 8.
    rows = max(1, target_block_bytes // (bl * itemsize))
    if N >= 8:
        bn = max(8, (min(rows, N) // 8) * 8)
    else:
        bn = N

    # Ensure >= 2 grid steps on medium tensors so both v7x TCs get work.
    if N >= 16 and lane <= bl:
        half = (((N + 1) // 2) + 7) // 8 * 8
        bn = min(bn, half)

    grid = (pl.cdiv(N, bn), pl.cdiv(lane, bl))
    # Ragged N / lane: Pallas clips partial edge blocks (garbage is read into
    # the unused part of the tile but never written back) -> no pad/slice.

    alpha_smem = jnp.asarray(alpha, dtype=jnp.float32).reshape((1,))

    out = pl.pallas_call(
        dyt_kernel,
        out_shape=jax.ShapeDtypeStruct((N, lane), x.dtype),
        grid_spec=pltpu.PrefetchScalarGridSpec(
            num_scalar_prefetch=0,
            grid=grid,
            in_specs=[
                pl.BlockSpec(memory_space=pltpu.MemorySpace.SMEM),  # alpha (1,)
                pl.BlockSpec((1, bl), lambda i, j: (0, j)),         # gamma
                pl.BlockSpec((1, bl), lambda i, j: (0, j)),         # beta
                pl.BlockSpec((bn, bl), lambda i, j: (i, j)),        # x tile
            ],
            out_specs=pl.BlockSpec((bn, bl), lambda i, j: (i, j)),
        ),
        compiler_params=pltpu.CompilerParams(
            dimension_semantics=("parallel", "parallel"),
            vmem_limit_bytes=vmem_limit_bytes),
    )(alpha_smem, g2, b2, x2)

    if pad_rows:
        out = out.reshape(-1, C)[:n_rows]
    return out.reshape(orig_shape)


def _check(x, alpha, gamma, beta):
    y = jax.block_until_ready(dyt_forward(x, alpha, gamma, beta))
    y_ref = gamma * jnp.tanh(alpha * x) + beta
    assert y.shape == x.shape
    assert jnp.allclose(y, y_ref, atol=1e-5, rtol=1e-5)
    return y


if __name__ == "__main__":
    key = jax.random.PRNGKey(0)

    # Primary small shape implied by the module's (..., C) forward.
    B, T, C = 2, 8, 32
    init_alpha = 0.5
    alpha = jnp.ones((1,), dtype=jnp.float32) * init_alpha
    beta = jnp.ones((C,), dtype=jnp.float32)
    gamma = jnp.ones((C,), dtype=jnp.float32)
    x = jax.random.normal(key, (B, T, C), dtype=jnp.float32)
    _check(x, alpha, gamma, beta)

    # Ragged row count with C % 128 != 0 (exercises the small row-pad path).
    k1, k2 = jax.random.split(key)
    x2 = jax.random.normal(k1, (3, 7, C), dtype=jnp.float32)
    _check(x2, alpha, gamma, beta)

    # C multiple of 128 with a partial last row-block (no pad, clipped block).
    C3 = 256
    x3 = jax.random.normal(k2, (2, 9, C3), dtype=jnp.float32)
    _check(x3, alpha,
           jnp.ones((C3,), jnp.float32), jnp.ones((C3,), jnp.float32))

    print("KERNEL_OK")
</pallas_src>

<mosaic_0001>
module attributes {stable_mosaic.version = 11 : i64} {
  func.func @dyt_kernel(%arg0: i32, %arg1: i32, %arg2: memref<1xf32, #tpu.memory_space<smem>>, %arg3: memref<1x128xf32, #tpu.memory_space<vmem>>, %arg4: memref<1x128xf32, #tpu.memory_space<vmem>>, %arg5: memref<4x128xf32, #tpu.memory_space<vmem>>, %arg6: memref<4x128xf32, #tpu.memory_space<vmem>>) attributes {dimension_semantics = [#tpu.dimension_semantics<parallel>, #tpu.dimension_semantics<parallel>], iteration_bounds = array<i64: 1, 1>, scalar_prefetch = 0 : i64, scratch_operands = 0 : i64, tpu.core_type = #tpu.core_type<tc>, window_params = [{transform_indices = @transform_0, window_bounds = array<i64: 1>}, {transform_indices = @transform_1, window_bounds = array<i64: 1, 128>}, {transform_indices = @transform_2, window_bounds = array<i64: 1, 128>}, {transform_indices = @transform_3, window_bounds = array<i64: 4, 128>}, {transform_indices = @transform_4, window_bounds = array<i64: 4, 128>}]} {
    %c0 = arith.constant 0 : index
    %0 = memref.load %arg2[%c0] : memref<1xf32, #tpu.memory_space<smem>>
    %c0_0 = arith.constant 0 : index
    %c0_1 = arith.constant 0 : index
    %1 = vector.load %arg5[%c0_0, %c0_1] : memref<4x128xf32, #tpu.memory_space<vmem>>, vector<4x128xf32>
    %2 = vector.broadcast %0 : f32 to vector<4x128xf32>
    %3 = arith.mulf %2, %1 : vector<4x128xf32>
    %4 = math.tanh %3 : vector<4x128xf32>
    %c0_2 = arith.constant 0 : index
    %c0_3 = arith.constant 0 : index
    %5 = vector.load %arg3[%c0_2, %c0_3] : memref<1x128xf32, #tpu.memory_space<vmem>>, vector<1x128xf32>
    %6 = vector.broadcast %5 : vector<1x128xf32> to vector<4x128xf32>
    %7 = arith.mulf %6, %4 : vector<4x128xf32>
    %c0_4 = arith.constant 0 : index
    %c0_5 = arith.constant 0 : index
    %8 = vector.load %arg4[%c0_4, %c0_5] : memref<1x128xf32, #tpu.memory_space<vmem>>, vector<1x128xf32>
    %9 = vector.broadcast %8 : vector<1x128xf32> to vector<4x128xf32>
    %10 = arith.addf %7, %9 : vector<4x128xf32>
    %c0_6 = arith.constant 0 : index
    %c0_7 = arith.constant 0 : index
    %11 = vector.load %arg6[%c0_6, %c0_7] : memref<4x128xf32, #tpu.memory_space<vmem>>, vector<4x128xf32>
    tpu.vector_store %arg6[%c0_6, %c0_7], %10 {strides = array<i32>} : memref<4x128xf32, #tpu.memory_space<vmem>>, vector<4x128xf32>,
    return
  }
  func.func @transform_0(%arg0: i32, %arg1: i32) -> i32 {
    %c0_i32 = arith.constant 0 : i32
    %c0_i32_0 = arith.constant 0 : i32
    return %c0_i32 : i32
  }
  func.func @transform_1(%arg0: i32, %arg1: i32) -> (i32, i32) {
    %c0_i32 = arith.constant 0 : i32
    %c0_i32_0 = arith.constant 0 : i32
    return %c0_i32, %arg1 : i32, i32
  }
  func.func @transform_2(%arg0: i32, %arg1: i32) -> (i32, i32) {
    %c0_i32 = arith.constant 0 : i32
    %c0_i32_0 = arith.constant 0 : i32
    return %c0_i32, %arg1 : i32, i32
  }
  func.func @transform_3(%arg0: i32, %arg1: i32) -> (i32, i32) {
    %c0_i32 = arith.constant 0 : i32
    return %arg0, %arg1 : i32, i32
  }
  func.func @transform_4(%arg0: i32, %arg1: i32) -> (i32, i32) {
    %c0_i32 = arith.constant 0 : i32
    return %arg0, %arg1 : i32, i32
  }
}

</mosaic_0001>

<bundles_post_ra>
// kernel: tpu_custom_call.1
= control target key start
LH: loop header
LB: loop body
LE: loop exit
PB: predicated region body
PF: predicated region fallthrough
CT: control target
= control target key end

     0   :  { %10 = vsyncpa [#allocation4], 0  ;;  %s160_s0 = inlined_call_operand.<no memory space> [shape: f32[1], index: 0, kind: input, shape index: {}]   ;;  %s161_s1 = inlined_call_operand.vmem [shape: f32[1,128], index: 1, kind: input, shape index: {}]   ;;  %s162_s2 = inlined_call_operand.hbm [shape: f32[1,128], index: 2, kind: input, shape index: {}]   ;;  %s163_s3 = inlined_call_operand.vmem [shape: f32[4,128], index: 3, kind: input, shape index: {}]   ;;  %s164_s4 = inlined_call_operand.hbm [shape: f32[4,128], index: 4, kind: output, shape index: {}]  }
   0x1   :  { %11 = vsyncpa [#allocation5], 0  ;;  %s118_s15 = smov [#allocation3]  }
   0x2   :  { %s22_s16 = sshll.u32 %s118_s15, 4  ;;  %s23_s16 = int_to_ptr.vmem [resolvable:$true] %s22_s16 }
   0x3   :  { %s82_s17 = scalar_lea.vmem %s23_s16, 16  ;;  %s86_s18 = scalar_lea.vmem %s23_s16, 32 }
   0x4   :  { %p83_p0 = scmp.ne.s32.totalorder %s23_s16, %s82_s17  ;;  %p87_p1 = scmp.lt.s32.totalorder %s23_s16, %s23_s16 }
   0x5   :  { %p88_p2 = scmp.lt.s32.totalorder %s86_s18, %s82_s17 }
   0x7   :  { %p89_p3 = por %p88_p2, %p87_p1 }
   0x9   :  { %p90_p4 = pnand %p89_p3, %p83_p0 }
   0xb   :  { %93 = shalt.err (!%p90_p4)
}
   0xc   :  { %25 = dma.hbm_to_vmem [thread:$0]  %s162_s2, 16, %s23_s16, [#allocation4]  }
   0xd   :  { %114 = dma.done.wait [#allocation4], 16  }
   0xe   :  { %115 = vsyncadd [#allocation4], 4294967280  ;;  %v33_v0 = vstv %s160_s0  ;;  %v32_v1 = vld [vmem:[%s163_s3] sm:$0xf]  ;;  %s119_s27 = smov [#allocation6]  }
   0xf   :  { %v34_v2 = vmul.f32 %v33_v0, %v32_v1  ;;  %v68_v3 = vld [vmem:[%s161_s1] ss:$0 sm:$0xff]  ;;  %s59_s2 = sshll.u32 %s119_s27, 4  ;;  %s60_s2 = int_to_ptr.vmem [resolvable:$true] %s59_s2 }
  0x10   :  { %v69_v5 = vld [vmem:[#allocation3] ss:$0 sm:$0xff]  ;;  %s94_s28 = scalar_lea.vmem %s60_s2, 64  ;;  %p99_p6 = scmp.lt.s32.totalorder %s60_s2, %s60_s2 }
  0x11   :  { %72 = vtanh.f32 %v34_v2  ;;  %p95_p5 = scmp.ne.s32.totalorder %s60_s2, %s94_s28  ;;  %p100_p7 = scmp.lt.s32.totalorder %s94_s28, %s94_s28 }
  0x13   :  { %p101_p8 = por %p100_p7, %p99_p6 }
  0x15   :  { %p102_p9 = pnand %p101_p8, %p95_p5 }
  0x1e   :  { %v73_v4 = vpop.eup %72 }
  0x1f   :  { %v43_v6 = vmul.f32 %v73_v4, %v68_v3 }
  0x21   :  { %v51_v7 = vadd.f32 %v69_v5, %v43_v6 }
  0x23   :  { %52 = vst [vmem:[#allocation6] sm:$0xf] %v51_v7 }
  0x24   :  { %105 = shalt.err (!%p102_p9)
}
  0x25   :  { %62 = dma.vmem_to_hbm [thread:$0]  %s60_s2, 64, %s164_s4, [#allocation5]  }
  0x26   :  { %116 = dma.done.wait [#allocation5], 64  }
  0x27   :  { %117 = vsyncadd [#allocation5], 4294967232 }
  0x28   :  { %66 = vsyncpa [#allocation4], 1 }
  0x29   :  { %67 = vsyncpa [#allocation5], 1 }

</bundles_post_ra>
